<compile_context>
chip_gen: v7x
topology: tpu7x:2x2x1
jax: 0.10.0
libtpu: 0.0.40
codegen_flags: <defaults>
</compile_context>

<pallas_src>
import functools

import jax
import jax.numpy as jnp
from jax.experimental import pallas as pl
from jax.experimental.pallas import tpu as pltpu


# ----------------------------------------------------------------------------
# Kernels
# ----------------------------------------------------------------------------
def _two_class_softmax(logits):
    """softmax([l0, l1]) == [1 - sigmoid(l1 - l0), sigmoid(l1 - l0)].

    One EUP exp + one divide (no cross-lane max/sum); p0 = 1 - p1 guarantees
    rows sum to (essentially) exactly 1.
    """
    d = logits[:, 1:2] - logits[:, 0:1]                                # (TB, 1)
    p1 = 1.0 / (1.0 + jnp.exp(-d))                                     # (TB, 1)
    col_is_1 = jax.lax.broadcasted_iota(jnp.int32, logits.shape, 1) == 1
    return jnp.where(col_is_1, p1, 1.0 - p1)                           # (TB, 2)


def _fwd_plain_kernel(x_ref, w1_ref, b1_ref, w4_ref, b4_ref, o_ref):
    # bf16 cast of the streamed tile happens in-kernel (hidden under the DMA);
    # matmuls accumulate in f32 on the MXU.
    xb = x_ref[...].astype(jnp.bfloat16)
    h = jnp.tanh(
        jnp.dot(xb, w1_ref[...], preferred_element_type=jnp.float32) + b1_ref[...]
    )
    # TODO(synk): dropout1 is identity in eval mode; train-mode dropout not implemented.
    logits = (
        jnp.dot(h.astype(jnp.bfloat16), w4_ref[...],
                preferred_element_type=jnp.float32)
        + b4_ref[...]
    )
    o_ref[...] = _two_class_softmax(logits).astype(o_ref.dtype)


def _fwd_extra_kernel(x_ref, xe_ref, w1_ref, b1_ref, w3h_ref, w3e_ref, b3_ref, o_ref):
    xb = x_ref[...].astype(jnp.bfloat16)
    h = jnp.tanh(
        jnp.dot(xb, w1_ref[...], preferred_element_type=jnp.float32) + b1_ref[...]
    )
    # concat([h, x2, x3]) @ W3 expressed as two partitioned matmuls — [x2, x3]
    # is pre-concatenated (padded to 32 lanes) in the wrapper; its weight slice
    # is one (32, 2) matrix.
    logits = (
        jnp.dot(h.astype(jnp.bfloat16), w3h_ref[...],
                preferred_element_type=jnp.float32)
        + jnp.dot(xe_ref[...].astype(jnp.bfloat16), w3e_ref[...],
                  preferred_element_type=jnp.float32)
        + b3_ref[...]
    )
    o_ref[...] = _two_class_softmax(logits).astype(o_ref.dtype)


# ----------------------------------------------------------------------------
# Wrapper
# ----------------------------------------------------------------------------
def _round_up(v, m):
    return ((v + m - 1) // m) * m


def _jnp_forward(params, x, additional_features=False, x2=None, x3=None):
    """Plain XLA path (used for small batches and as a reference)."""
    h = jnp.tanh(x @ params["w1"] + params["b1"])
    if additional_features:
        cat = jnp.concatenate(
            [h, x2.reshape(-1, 1).astype(jnp.float32), x3.astype(jnp.float32)], axis=1)
        logits = cat @ params["w3"] + params["b3"]
    else:
        logits = h @ params["w4"] + params["b4"]
    return jax.nn.softmax(logits, axis=1)


@functools.partial(jax.jit, static_argnames=("additional_features", "force_pallas"))
def counterspeech_forward(params, x, additional_features=False, x2=None, x3=None,
                          force_pallas=False):
    """Pallas-fused forward pass of CounterspeechNN (eval mode)."""
    B, F = x.shape

    # Small batches: launch + per-grid-step overhead dominates; let XLA fuse it.
    if B < 512 and not force_pallas:
        return _jnp_forward(params, x, additional_features, x2, x3)

    H = params["w1"].shape[1]
    HP = _round_up(H, 128)            # lane-dense hidden dim (full vreg / MXU width)

    # --- batch tile selection -----------------------------------------------
    # Keep each streamed x buffer <= ~6 MiB (double-buffered it stays well
    # under the 32 MiB scoped VMEM default on every generation), and keep at
    # least 2 grid steps where possible so the "parallel" batch axis shards
    # across both v7x TensorCores.  TB is always a multiple of 8 (sublanes).
    itemsize = jnp.dtype(x.dtype).itemsize
    tb_cap = min(8192, max(8, ((6 * 1024 * 1024) // (F * itemsize)) // 8 * 8))
    if B >= 2 * tb_cap:
        TB = tb_cap
    else:
        TB = min(tb_cap, max(8, _round_up(pl.cdiv(B, 2), 8)))
    grid = (pl.cdiv(B, TB),)          # ragged last block handled by the pipeline

    x_spec = pl.BlockSpec((TB, F), lambda i: (i, 0))
    out_spec = pl.BlockSpec((TB, 2), lambda i: (i, 0))
    out_shape = jax.ShapeDtypeStruct((B, 2), jnp.float32)
    cparams = pltpu.CompilerParams(dimension_semantics=("parallel",))

    def const_spec(a):
        # Full-array block, constant index map -> fetched once, kept resident.
        return pl.BlockSpec(a.shape, lambda i: (0, 0))

    # Weights are tiny: cast/pad them in the wrapper (x itself is NOT touched).
    w1_p = jnp.pad(params["w1"], ((0, 0), (0, HP - H))).astype(jnp.bfloat16)
    b1_p = jnp.pad(params["b1"], ((0, 0), (0, HP - H)))   # f32; tanh(0)=0 in padded lanes

    if not additional_features:
        w4_p = jnp.pad(params["w4"], ((0, HP - H), (0, 0))).astype(jnp.bfloat16)
        b4 = params["b4"]
        args = (x, w1_p, b1_p, w4_p, b4)
        in_specs = [x_spec, const_spec(w1_p), const_spec(b1_p),
                    const_spec(w4_p), const_spec(b4)]
        kernel = _fwd_plain_kernel
        flops = 2 * B * F * HP + 2 * B * HP * 2
        bytes_accessed = (x.size * itemsize + (w1_p.size + w4_p.size) * 2
                          + (b1_p.size + b4.size + B * 2) * 4)
    else:
        E, EP = 26, 32                 # 1 (x2) + 25 (x3), padded to 32 lanes (tiny)
        xe = jnp.concatenate(
            [x2.reshape(B, 1).astype(jnp.float32), x3.astype(jnp.float32)], axis=1)
        xe_p = jnp.pad(xe, ((0, 0), (0, EP - E)))
        w3 = params["w3"]              # (H + 26, 2)
        w3h_p = jnp.pad(w3[:H], ((0, HP - H), (0, 0))).astype(jnp.bfloat16)
        w3e_p = jnp.pad(w3[H:], ((0, EP - E), (0, 0))).astype(jnp.bfloat16)
        b3 = params["b3"]
        args = (x, xe_p, w1_p, b1_p, w3h_p, w3e_p, b3)
        in_specs = [x_spec, pl.BlockSpec((TB, EP), lambda i: (i, 0)),
                    const_spec(w1_p), const_spec(b1_p),
                    const_spec(w3h_p), const_spec(w3e_p), const_spec(b3)]
        kernel = _fwd_extra_kernel
        flops = 2 * B * F * HP + 2 * B * HP * 2 + 2 * B * EP * 2
        bytes_accessed = ((x.size + xe_p.size) * itemsize
                          + (w1_p.size + w3h_p.size + w3e_p.size) * 2
                          + (b1_p.size + b3.size + B * 2) * 4)

    out = pl.pallas_call(
        kernel,
        out_shape=out_shape,
        grid=grid,
        in_specs=in_specs,
        out_specs=out_spec,
        compiler_params=cparams,
        cost_estimate=pl.CostEstimate(
            flops=flops,
            transcendentals=B * HP + B,        # tanh + one exp per row
            bytes_accessed=int(bytes_accessed)),
    )(*args)
    return out


# ----------------------------------------------------------------------------
# Deterministic parameter init (shapes follow the PyTorch __init__, stored
# transposed so the kernel does plain x @ W + b).
# ----------------------------------------------------------------------------
def init_params(key, num_features=256):
    F = num_features
    H = F // 4
    k = jax.random.split(key, 8)

    def lin(kw, kb, fan_in, fan_out):
        # PyTorch nn.Linear default init: U(-1/sqrt(fan_in), 1/sqrt(fan_in))
        bound = 1.0 / jnp.sqrt(fan_in)
        w = jax.random.uniform(kw, (fan_in, fan_out), jnp.float32, -bound, bound)
        b = jax.random.uniform(kb, (1, fan_out), jnp.float32, -bound, bound)
        return w, b

    w1, b1 = lin(k[0], k[1], F, H)          # fc1: F -> F//4
    w2, b2 = lin(k[2], k[3], F, F // 2)     # fc2 (unused in forward)
    w3, b3 = lin(k[4], k[5], H + 26, 2)     # fc3: F//4 + 26 -> 2
    w4, b4 = lin(k[6], k[7], H, 2)          # fc4: F//4 -> 2
    return {"w1": w1, "b1": b1, "w2": w2, "b2": b2,
            "w3": w3, "b3": b3, "w4": w4, "b4": b4}


if __name__ == "__main__":
    key = jax.random.PRNGKey(0)
    k_param, k_x, k_x2, k_x3 = jax.random.split(key, 4)

    NUM_FEATURES = 256   # small, consistent with the module (divisible by 4)
    BATCH = 8

    params = init_params(k_param, num_features=NUM_FEATURES)

    x = jax.random.normal(k_x, (BATCH, NUM_FEATURES), jnp.float32)
    x2 = jax.random.bernoulli(k_x2, 0.5, (BATCH,)).astype(jnp.float32)
    x3 = jax.random.normal(k_x3, (BATCH, 25), jnp.float32)

    # default path: fc1 -> tanh -> fc4 -> softmax   (force the Pallas kernel)
    out_plain = jax.block_until_ready(
        counterspeech_forward(params, x, additional_features=False,
                              force_pallas=True))

    # additional-features path: fc1 -> tanh -> cat(x2, x3) -> fc3 -> softmax
    out_extra = jax.block_until_ready(
        counterspeech_forward(params, x, additional_features=True, x2=x2, x3=x3,
                              force_pallas=True))

    # small-batch dispatch (XLA fallback) — cheap sanity check of the wrapper
    out_fallback = jax.block_until_ready(
        counterspeech_forward(params, x, additional_features=False))

    ref_plain = _jnp_forward(params, x)
    ref_extra = _jnp_forward(params, x, True, x2, x3)

    assert out_plain.shape == (BATCH, 2) and out_extra.shape == (BATCH, 2)
    # bf16 streaming matmuls -> compare against the f32 reference with a
    # tolerance that comfortably covers the reduced precision.
    assert jnp.allclose(out_plain, ref_plain, atol=2e-2, rtol=2e-2)
    assert jnp.allclose(out_extra, ref_extra, atol=2e-2, rtol=2e-2)
    assert jnp.allclose(out_fallback, ref_plain, atol=1e-5, rtol=1e-5)
    # p0 = 1 - p1 -> rows sum to 1 up to a single f32 rounding
    assert jnp.allclose(jnp.sum(out_plain, axis=1), 1.0, atol=1e-5)
    assert jnp.allclose(jnp.sum(out_extra, axis=1), 1.0, atol=1e-5)

    print("KERNEL_OK")
</pallas_src>

<mosaic_0001>
module attributes {stable_mosaic.version = 11 : i64} {
  func.func @_fwd_plain_kernel(%arg0: i32, %arg1: memref<8x256xf32, #tpu.memory_space<vmem>>, %arg2: memref<256x128xbf16, #tpu.memory_space<vmem>>, %arg3: memref<1x128xf32, #tpu.memory_space<vmem>>, %arg4: memref<128x2xbf16, #tpu.memory_space<vmem>>, %arg5: memref<1x2xf32, #tpu.memory_space<vmem>>, %arg6: memref<8x2xf32, #tpu.memory_space<vmem>>) attributes {dimension_semantics = [#tpu.dimension_semantics<parallel>], iteration_bounds = array<i64: 1>, scalar_prefetch = 0 : i64, scratch_operands = 0 : i64, tpu.core_type = #tpu.core_type<tc>, window_params = [{transform_indices = @transform_0, window_bounds = array<i64: 8, 256>}, {pipeline_mode = #tpu.pipeline_mode<synchronous>, transform_indices = @transform_1, window_bounds = array<i64: 256, 128>}, {pipeline_mode = #tpu.pipeline_mode<synchronous>, transform_indices = @transform_2, window_bounds = array<i64: 1, 128>}, {pipeline_mode = #tpu.pipeline_mode<synchronous>, transform_indices = @transform_3, window_bounds = array<i64: 128, 2>}, {pipeline_mode = #tpu.pipeline_mode<synchronous>, transform_indices = @transform_4, window_bounds = array<i64: 1, 2>}, {transform_indices = @transform_5, window_bounds = array<i64: 8, 2>}]} {
    %c0 = arith.constant 0 : index
    %c0_0 = arith.constant 0 : index
    %0 = vector.load %arg1[%c0, %c0_0] : memref<8x256xf32, #tpu.memory_space<vmem>>, vector<8x256xf32>
    %1 = arith.truncf %0 : vector<8x256xf32> to vector<8x256xbf16>
    %c0_1 = arith.constant 0 : index
    %c0_2 = arith.constant 0 : index
    %2 = vector.load %arg2[%c0_1, %c0_2] : memref<256x128xbf16, #tpu.memory_space<vmem>>, vector<256x128xbf16>
    %cst = arith.constant dense<0.000000e+00> : vector<8x128xf32>
    %3 = tpu.matmul %1, %2, %cst {dimension_numbers = #tpu.dot_dimension_numbers<[1], [0], [0], [1], [0, 0, 1, 1], [], []>} : vector<8x256xbf16>, vector<256x128xbf16>, vector<8x128xf32> -> vector<8x128xf32>
    %c0_3 = arith.constant 0 : index
    %c0_4 = arith.constant 0 : index
    %4 = vector.load %arg3[%c0_3, %c0_4] : memref<1x128xf32, #tpu.memory_space<vmem>>, vector<1x128xf32>
    %5 = vector.broadcast %4 : vector<1x128xf32> to vector<8x128xf32>
    %6 = arith.addf %3, %5 : vector<8x128xf32>
    %7 = math.tanh %6 : vector<8x128xf32>
    %8 = arith.truncf %7 : vector<8x128xf32> to vector<8x128xbf16>
    %c0_5 = arith.constant 0 : index
    %c0_6 = arith.constant 0 : index
    %9 = vector.load %arg4[%c0_5, %c0_6] : memref<128x2xbf16, #tpu.memory_space<vmem>>, vector<128x2xbf16>
    %cst_7 = arith.constant dense<0.000000e+00> : vector<8x2xf32>
    %10 = tpu.matmul %8, %9, %cst_7 {dimension_numbers = #tpu.dot_dimension_numbers<[1], [0], [0], [1], [0, 0, 1, 1], [], []>} : vector<8x128xbf16>, vector<128x2xbf16>, vector<8x2xf32> -> vector<8x2xf32>
    %c0_8 = arith.constant 0 : index
    %c0_9 = arith.constant 0 : index
    %11 = vector.load %arg5[%c0_8, %c0_9] : memref<1x2xf32, #tpu.memory_space<vmem>>, vector<1x2xf32>
    %12 = vector.broadcast %11 : vector<1x2xf32> to vector<8x2xf32>
    %13 = arith.addf %10, %12 : vector<8x2xf32>
    %14 = vector.extract_strided_slice %13 {offsets = [0, 1], sizes = [8, 1], strides = [1, 1]} : vector<8x2xf32> to vector<8x1xf32>
    %15 = vector.extract_strided_slice %13 {offsets = [0, 0], sizes = [8, 1], strides = [1, 1]} : vector<8x2xf32> to vector<8x1xf32>
    %16 = arith.subf %14, %15 : vector<8x1xf32>
    %cst_10 = arith.constant 0.000000e+00 : f32
    %17 = vector.broadcast %cst_10 : f32 to vector<8x1xf32>
    %18 = arith.subf %17, %16 : vector<8x1xf32>
    %19 = math.exp %18 : vector<8x1xf32>
    %cst_11 = arith.constant 1.000000e+00 : f32
    %20 = vector.broadcast %cst_11 : f32 to vector<8x1xf32>
    %21 = arith.addf %20, %19 : vector<8x1xf32>
    %cst_12 = arith.constant 1.000000e+00 : f32
    %22 = vector.broadcast %cst_12 : f32 to vector<8x1xf32>
    %23 = arith.divf %22, %21 : vector<8x1xf32>
    %24 = tpu.iota {dimensions = array<i32: 1>} : vector<8x2xi32>
    %c1_i32 = arith.constant 1 : i32
    %25 = vector.broadcast %c1_i32 : i32 to vector<8x2xi32>
    %26 = arith.cmpi eq, %24, %25 : vector<8x2xi32>
    %cst_13 = arith.constant 1.000000e+00 : f32
    %27 = vector.broadcast %cst_13 : f32 to vector<8x1xf32>
    %28 = arith.subf %27, %23 : vector<8x1xf32>
    %29 = vector.shape_cast %23 : vector<8x1xf32> to vector<8x1xf32>
    %30 = vector.broadcast %29 : vector<8x1xf32> to vector<8x2xf32>
    %31 = vector.shape_cast %28 : vector<8x1xf32> to vector<8x1xf32>
    %32 = vector.broadcast %31 : vector<8x1xf32> to vector<8x2xf32>
    %33 = arith.select %26, %30, %32 : vector<8x2xi1>, vector<8x2xf32>
    %c0_14 = arith.constant 0 : index
    %c0_15 = arith.constant 0 : index
    %34 = vector.load %arg6[%c0_14, %c0_15] : memref<8x2xf32, #tpu.memory_space<vmem>>, vector<8x2xf32>
    tpu.vector_store %arg6[%c0_14, %c0_15], %33 {strides = array<i32>} : memref<8x2xf32, #tpu.memory_space<vmem>>, vector<8x2xf32>,
    return
  }
  func.func @transform_0(%arg0: i32) -> (i32, i32) {
    %c0_i32 = arith.constant 0 : i32
    %c0_i32_0 = arith.constant 0 : i32
    return %arg0, %c0_i32 : i32, i32
  }
  func.func @transform_1(%arg0: i32) -> (i32, i32) {
    %c0_i32 = arith.constant 0 : i32
    %c0_i32_0 = arith.constant 0 : i32
    %c0_i32_1 = arith.constant 0 : i32
    return %c0_i32, %c0_i32_0 : i32, i32
  }
  func.func @transform_2(%arg0: i32) -> (i32, i32) {
    %c0_i32 = arith.constant 0 : i32
    %c0_i32_0 = arith.constant 0 : i32
    %c0_i32_1 = arith.constant 0 : i32
    return %c0_i32, %c0_i32_0 : i32, i32
  }
  func.func @transform_3(%arg0: i32) -> (i32, i32) {
    %c0_i32 = arith.constant 0 : i32
    %c0_i32_0 = arith.constant 0 : i32
    %c0_i32_1 = arith.constant 0 : i32
    return %c0_i32, %c0_i32_0 : i32, i32
  }
  func.func @transform_4(%arg0: i32) -> (i32, i32) {
    %c0_i32 = arith.constant 0 : i32
    %c0_i32_0 = arith.constant 0 : i32
    %c0_i32_1 = arith.constant 0 : i32
    return %c0_i32, %c0_i32_0 : i32, i32
  }
  func.func @transform_5(%arg0: i32) -> (i32, i32) {
    %c0_i32 = arith.constant 0 : i32
    %c0_i32_0 = arith.constant 0 : i32
    return %arg0, %c0_i32 : i32, i32
  }
}

</mosaic_0001>

<bundles_post_ra>
// kernel: counterspeech_forward.1
= control target key start
LH: loop header
LB: loop body
LE: loop exit
PB: predicated region body
PF: predicated region fallthrough
CT: control target
= control target key end

     0   :  { %v458_v1 = vmov 0.0   ;;  %vm459_vm0 = vmmov 0   ;;  %v461_v44 = vmov 1   ;;  %v324_v53 = vlaneseq  ;;  %s588_s1 = inlined_call_operand.vmem [shape: bf16[256,128], index: 1, kind: input, shape index: {}]   ;;  %s589_s0 = inlined_call_operand.vmem [shape: f32[8,256], index: 0, kind: input, shape index: {}]   ;;  %s590_s3 = inlined_call_operand.vmem [shape: bf16[128,2], index: 3, kind: input, shape index: {}]   ;;  %s591_s2 = inlined_call_operand.vmem [shape: f32[1,128], index: 2, kind: input, shape index: {}]   ;;  %s592_s4 = inlined_call_operand.vmem [shape: f32[1,2], index: 4, kind: input, shape index: {}]   ;;  %s593_s5 = inlined_call_operand.vmem [shape: f32[8,2], index: 5, kind: output, shape index: {}]  }
   0x1   :  { %v428_v0 = vld [vmem:[%s588_s1 + $0x40] sm:$0xff]   ;;  %402 = vmatprep.subr.bf16.mxu1 %v458_v1  ;;  %v430_v3 = vld [vmem:[%s588_s1 + $0x48] sm:$0xff]   ;;  %v432_v5 = vld [vmem:[%s588_s1 + $0x50] sm:$0xff]   ;;  %418 = vmatprep.mubr.msk.bf16.mxu1 %vm459_vm0, %v458_v1  ;;  %vm339_vm2 = vcmask 15360  }
   0x2   :  { %v429_v2 = vld [vmem:[%s588_s1] sm:$0xff]   ;;  %371 = vmatprep.subr.bf16.mxu0 %v428_v0  ;;  %v431_v4 = vld [vmem:[%s588_s1 + $0x8] sm:$0xff]   ;;  %v433_v6 = vld [vmem:[%s588_s1 + $0x10] sm:$0xff]   ;;  %426 = vset.pattern.permute.xlu0 %v461_v44  ;;  %v325_v54 = vand.u32 127, %v324_v53 }
   0x3   :  { %372 = vmatpush3.bf16.msra.mxu0 %v429_v2  ;;  %v434_v7 = vld [vmem:[%s588_s1 + $0x58] sm:$0xff]   ;;  %v436_v9 = vld [vmem:[%s588_s1 + $0x60] sm:$0xff]   ;;  %v438_v11 = vld [vmem:[%s588_s1 + $0x68] sm:$0xff]   ;;  %427 = vset.pattern.permute.xlu1 %v461_v44 }
   0x4   :  { %373 = vmatprep.subr.bf16.mxu0 %v430_v3  ;;  %v435_v8 = vld [vmem:[%s588_s1 + $0x18] sm:$0xff]   ;;  %v437_v10 = vld [vmem:[%s588_s1 + $0x20] sm:$0xff]   ;;  %v22_v12 = vld [vmem:[%s589_s0 + $0x8] sm:$0xff]  ;;  %vm326_vm1 = vcmp.eq.s32.totalorder %v325_v54, 1 }
   0x5   :  { %v439_v13 = vld [vmem:[%s588_s1 + $0x28] sm:$0xff]   ;;  %v24_v14 = vpack.c.bf16 %v22_v12, %v22_v12  ;;  %v444_v15 = vld [vmem:[%s590_s3] sm:$0xff]   ;;  %v440_v16 = vld [vmem:[%s588_s1 + $0x70] sm:$0xff]  }
   0x6   :  { %v445_v17 = vld [vmem:[%s590_s3 + $0x8] sm:$0xff]   ;;  %403 = vmatpush3.bf16.msra.mxu1 %v444_v15  ;;  %v441_v18 = vld [vmem:[%s588_s1 + $0x30] sm:$0xff]   ;;  %v442_v19 = vld [vmem:[%s588_s1 + $0x78] sm:$0xff]  }
   0x7   :  { %374 = vmatpush3.bf16.msra.mxu0 %v431_v4  ;;  %192 = vmatprep.mubr.bf16.mxu0 %v24_v14  ;;  %v446_v20 = vld [vmem:[%s590_s3 + $0x10] sm:$0xff]   ;;  %v443_v21 = vld [vmem:[%s588_s1 + $0x38] sm:$0xff]   ;;  %v21_v22 = vld [vmem:[%s589_s0] sm:$0xff] }
   0x8   :  { %375 = vmatprep.subr.bf16.mxu0 %v432_v5  ;;  %404 = vmatprep.subr.bf16.mxu1 %v458_v1  ;;  %v23_v23 = vpack.c.bf16 %v21_v22, %v21_v22  ;;  %v447_v24 = vld [vmem:[%s590_s3 + $0x18] sm:$0xff]   ;;  %v448_v25 = vld [vmem:[%s590_s3 + $0x20] sm:$0xff]   ;;  %v449_v26 = vld [vmem:[%s590_s3 + $0x28] sm:$0xff]  }
   0x9   :  { %v450_v27 = vld [vmem:[%s590_s3 + $0x30] sm:$0xff]   ;;  %v451_v28 = vld [vmem:[%s590_s3 + $0x38] sm:$0xff]   ;;  %v345_v30 = vld [vmem:[%s591_s2] ss:$0 sm:$0xff]  ;;  %s460_s3 = smov 1  }
   0xa   :  { %405 = vmatpush3.bf16.msra.mxu1 %v445_v17  ;;  %v362_v38 = vld [vmem:[%s592_s4] ss:$0 sm:$0xff] }
   0xb   :  { %376 = vmatpush3.bf16.msra.mxu0 %v433_v6  ;;  %406 = vmatprep.subr.bf16.mxu1 %v458_v1 }
   0xc   :  { %377 = vmatprep.subr.bf16.mxu0 %v434_v7 }
   0xe   :  { %407 = vmatpush3.bf16.msra.mxu1 %v446_v20 }
   0xf   :  { %378 = vmatpush3.bf16.msra.mxu0 %v435_v8  ;;  %408 = vmatprep.subr.bf16.mxu1 %v458_v1 }
  0x10   :  { %379 = vmatprep.subr.bf16.mxu0 %v436_v9 }
  0x12   :  { %409 = vmatpush3.bf16.msra.mxu1 %v447_v24 }
  0x13   :  { %380 = vmatpush3.bf16.msra.mxu0 %v437_v10  ;;  %410 = vmatprep.subr.bf16.mxu1 %v458_v1 }
  0x14   :  { %381 = vmatprep.subr.bf16.mxu0 %v438_v11 }
  0x16   :  { %411 = vmatpush3.bf16.msra.mxu1 %v448_v25 }
  0x17   :  { %382 = vmatpush3.bf16.msra.mxu0 %v439_v13  ;;  %412 = vmatprep.subr.bf16.mxu1 %v458_v1 }
  0x18   :  { %383 = vmatprep.subr.bf16.mxu0 %v440_v16 }
  0x1a   :  { %413 = vmatpush3.bf16.msra.mxu1 %v449_v26 }
  0x1b   :  { %384 = vmatpush3.bf16.msra.mxu0 %v441_v18  ;;  %414 = vmatprep.subr.bf16.mxu1 %v458_v1 }
  0x1c   :  { %385 = vmatprep.subr.bf16.mxu0 %v442_v19 }
  0x1e   :  { %415 = vmatpush3.bf16.msra.mxu1 %v450_v27 }
  0x1f   :  { %386 = vmatpush3.bf16.msra.mxu0 %v443_v21  ;;  %416 = vmatprep.subr.bf16.mxu1 %v458_v1 }
  0x22   :  { %193 = vmatmul.mubr.bf16.vlgmr.msra.gmra.mrb[0].mxu0 %v23_v23  ;;  %417 = vmatpush3.bf16.msra.mxu1 %v451_v28 }
  0xf5   :  { %v387_v29 = vpop.f32.mrb[0].mxu0 }
  0xf6   :  { %v388_v31 = vpop.f32.mrb[1].mxu0 }
  0xf7   :  { %v389_v32 = vadd.f32 %v388_v31, %v387_v29  ;;  %v390_v33 = vpop.f32.mrb[2].mxu0 }
  0xf8   :  { %v391_v34 = vpop.f32.mrb[3].mxu0 }
  0xf9   :  { %v195_v35 = vadd.f32 %v389_v32, %v345_v30 }
  0xfb   :  { %452 = vtanh.f32 %v195_v35 }
 0x105   :  { %v453_v36 = vpop.eup %452 }
 0x106   :  { %v201_v37 = vpack.c.bf16 %v453_v36, %v453_v36 }
 0x108   :  { %419 = vmatmul.mubr.bf16.vlgmr.msra.gmra.mrb[0].mxu1 %v201_v37 }
 0x1db   :  { %v307_v39 = vpop.f32.mrb[0].mxu1 }
 0x1dc   :  { %v308_v40 = vadd.f32 %v362_v38, %v307_v39  ;;  %v420_v41 = vpop.f32.mrb[1].mxu1 }
 0x1dd   :  { %v310_v42 = vpop.f32.mrb[2].mxu1 }
 0x1de   :  { %314 = vrot.lane.b32.xlu0 %v308_v40, %s460_s3  ;;  %v421_v43 = vpop.f32.mrb[3].mxu1 }
 0x250   :  { %v315_v45 = vpop.permute.xlu0 %314 }
 0x251   :  { %v317_v46 = vsub.f32 %v308_v40, %v315_v45 }
 0x253   :  { %v318_v47 = vsub.f32 0.0, %v317_v46 }
 0x255   :  { %v319_v48 = vmul.f32 1.442695, %v318_v47 }
 0x257   :  { %454 = vpow2.f32 %v319_v48 }
 0x261   :  { %v455_v49 = vpop.eup %454 }
 0x262   :  { %v321_v50 = vadd.f32 1.0, %v455_v49 }
 0x264   :  { %456 = vrcp.f32 %v321_v50 }
 0x26e   :  { %v457_v51 = vpop.eup %456 }
 0x26f   :  { %330 = vperm.xlu0 %426, %v457_v51   ;;  %v327_v52 = vsub.f32 1.0, %v457_v51 }
 0x271   :  { %335 = vperm.xlu1 %427, %v327_v52  }
 0x2ee   :  { %v331_v55 = vpop.permute.xlu0 %330 }
 0x2f0   :  { %v336_v56 = vpop.permute.xlu1 %335 }
 0x2f1   :  { %v338_v57 = vsel %vm326_vm1, %v331_v55, %v336_v56 }
 0x2f2   :  { %340 = vst.msk [vmem:[%s593_s5] sm:$0xff] %vm339_vm2, %v338_v57 }

</bundles_post_ra>
